<compile_context>
chip_gen: v7x
topology: tpu7x:2x2x1
jax: 0.10.0
libtpu: 0.0.40
codegen_flags: <defaults>
</compile_context>

<pallas_src>
import functools

import jax
import jax.numpy as jnp
from jax.experimental import pallas as pl
from jax.experimental.pallas import tpu as pltpu


def _graph2vec_kernel(adj_ref, x_ref, w_ref, b_ref, o_ref, *, n_per_graph):
    # adj_ref: [M, M]    bf16  block-diagonal (A + I) of BG graphs, M = BG * n_per_graph
    # x_ref:   [M, P]    bf16  node features, zero-padded to P lanes
    # w_ref:   [6, P, P] bf16  all six Linear weights, [in, out] layout, zero-padded
    # b_ref:   [6, P]    f32   all six biases, zero-padded
    # o_ref:   [BG, P]   f32   per-graph node-sum readout (padded lanes are exactly 0)
    adj = adj_ref[...]
    w = w_ref[...]
    b = b_ref[...]

    def gin(h, wa, ba, wb, bb):
        hb = h.astype(jnp.bfloat16)
        # neighbor aggregation: (1 + eps) * x + sum_j x_j  ==  (A + I) @ x   (eps = 0)
        agg = jnp.dot(adj, hb, preferred_element_type=jnp.float32)
        # MLP: Linear -> ReLU -> Linear (MXU operands bf16, bias/ReLU in f32)
        z = jnp.dot(agg.astype(jnp.bfloat16), wa, preferred_element_type=jnp.float32) + ba
        z = jnp.maximum(z, 0.0)
        z = jnp.dot(z.astype(jnp.bfloat16), wb, preferred_element_type=jnp.float32) + bb
        return z  # f32 [M, P]

    h = x_ref[...].astype(jnp.float32)
    h = gin(h, w[0], b[0:1], w[1], b[1:2])
    # F.dropout(training=False) -> identity
    h = gin(h, w[2], b[2:3], w[3], b[3:4])
    # F.dropout(training=False) -> identity
    h = gin(h, w[4], b[4:5], w[5], b[5:6])

    # readout: per-graph node sum (block-diag packing keeps graphs independent)
    bg, p = o_ref.shape
    o_ref[...] = jnp.sum(h.reshape(bg, n_per_graph, p), axis=1)


def graph2vec_forward(adj_blocks, x_blocks, w_slab, b_slab, *, n_per_graph, out_g_ch):
    """adj_blocks: [nb, M, M] bf16; x_blocks: [nb, M, P] bf16; w_slab: [6,P,P]; b_slab: [6,P]."""
    nblocks, M, _ = adj_blocks.shape
    P = x_blocks.shape[-1]
    BG = M // n_per_graph
    out = pl.pallas_call(
        functools.partial(_graph2vec_kernel, n_per_graph=n_per_graph),
        out_shape=jax.ShapeDtypeStruct((nblocks, BG, P), jnp.float32),
        grid=(nblocks,),
        in_specs=[
            pl.BlockSpec((None, M, M), lambda g: (g, 0, 0)),   # block-diag adj_hat, per block
            pl.BlockSpec((None, M, P), lambda g: (g, 0, 0)),   # node features, per block
            pl.BlockSpec((6, P, P), lambda g: (0, 0, 0)),      # weights, grid-resident
            pl.BlockSpec((6, P), lambda g: (0, 0)),            # biases, grid-resident
        ],
        out_specs=pl.BlockSpec((None, BG, P), lambda g: (g, 0, 0)),
        compiler_params=pltpu.CompilerParams(dimension_semantics=("parallel",)),
    )(adj_blocks, x_blocks, w_slab, b_slab)
    # padded output lanes (>= out_g_ch) are exactly zero -> slice is exact
    return out.reshape(nblocks * BG, P)[:, :out_g_ch]


def init_linear(key, fan_in, fan_out):
    """Deterministic init mimicking torch.nn.Linear default (uniform +-1/sqrt(fan_in))."""
    kw, kb = jax.random.split(key)
    bound = 1.0 / (fan_in ** 0.5)
    w = jax.random.uniform(kw, (fan_in, fan_out), jnp.float32, -bound, bound)
    b = jax.random.uniform(kb, (1, fan_out), jnp.float32, -bound, bound)
    return w, b


def pack_params(params, pad_dim):
    """Pack the six Linear layers into one weight slab [6,P,P] (bf16) + one bias slab [6,P] (f32)."""
    (w1a, b1a, w1b, b1b, w2a, b2a, w2b, b2b, w3a, b3a, w3b, b3b) = params
    P = pad_dim
    w_slab = jnp.zeros((6, P, P), jnp.float32)
    b_slab = jnp.zeros((6, P), jnp.float32)
    for i, (wi, bi) in enumerate(
        zip([w1a, w1b, w2a, w2b, w3a, w3b], [b1a, b1b, b2a, b2b, b3a, b3b])
    ):
        fi, fo = wi.shape
        w_slab = w_slab.at[i, :fi, :fo].set(wi)
        b_slab = b_slab.at[i, :fo].set(bi.reshape(-1))
    return w_slab.astype(jnp.bfloat16), b_slab


def build_adj_hat(src, dst, n_nodes):
    # A[dst, src] += 1 per edge; +I folds the GIN self term ((1+eps)*x, eps=0).
    a = jnp.zeros((n_nodes, n_nodes), jnp.float32).at[dst, src].add(1.0)
    return a + jnp.eye(n_nodes, dtype=jnp.float32)


def block_diag(adjs):
    # adjs: [BG, N, N] -> block-diagonal [BG*N, BG*N]
    bg, n, _ = adjs.shape
    out = jnp.zeros((bg * n, bg * n), adjs.dtype)
    for g in range(bg):
        out = out.at[g * n:(g + 1) * n, g * n:(g + 1) * n].set(adjs[g])
    return out


if __name__ == "__main__":
    # Small, deterministic problem.
    num_node_feat = 8
    num_edge_feat = 4      # edge_attr is unused by the forward pass (GINConv ignores it)
    g_hid = 32
    out_g_ch = 16
    N = 16                 # nodes per graph
    E = 48                 # edges per graph
    B = 8                  # graphs total
    BG = 4                 # graphs packed per grid step (block-diagonal adjacency)
    nblocks = B // BG
    M = BG * N             # rows per grid step (multiple of 8)
    # pad all channel dims up to the 128-lane width -> lane-dense loads/stores
    P = -(-max(num_node_feat, g_hid, out_g_ch) // 128) * 128

    key = jax.random.PRNGKey(0)
    keys = jax.random.split(key, 10)

    # Node features and random edge_index per graph.
    x = jax.random.normal(keys[0], (B, N, num_node_feat), jnp.float32)
    src = jax.random.randint(keys[1], (B, E), 0, N)
    dst = jax.random.randint(keys[2], (B, E), 0, N)
    edge_attr = jax.random.normal(keys[3], (B, E, num_edge_feat), jnp.float32)  # unused

    # Dense adjacency-hat per graph, then block-diagonal per group of BG graphs (JAX glue).
    adj_hat = jax.vmap(build_adj_hat, in_axes=(0, 0, None))(src, dst, N)          # [B,N,N]
    adj_blocks = jax.vmap(block_diag)(adj_hat.reshape(nblocks, BG, N, N))          # [nb,M,M]
    adj_blocks = adj_blocks.astype(jnp.bfloat16)                                   # exact (small ints)

    # Parameters for the three GIN MLPs (Linear->ReLU->Linear each).
    w1a, b1a = init_linear(keys[4], num_node_feat, g_hid)
    w1b, b1b = init_linear(keys[5], g_hid, g_hid)
    w2a, b2a = init_linear(keys[6], g_hid, g_hid)
    w2b, b2b = init_linear(keys[7], g_hid, g_hid)
    w3a, b3a = init_linear(keys[8], g_hid, g_hid)
    w3b, b3b = init_linear(keys[9], g_hid, out_g_ch)
    params = (w1a, b1a, w1b, b1b, w2a, b2a, w2b, b2b, w3a, b3a, w3b, b3b)

    w_slab, b_slab = pack_params(params, P)

    # Zero-pad node features to P lanes, group BG graphs per block, cast MXU operands to bf16.
    x_pad = jnp.zeros((B, N, P), jnp.float32).at[:, :, :num_node_feat].set(x)
    x_blocks = x_pad.reshape(nblocks, M, P).astype(jnp.bfloat16)

    out = graph2vec_forward(adj_blocks, x_blocks, w_slab, b_slab,
                            n_per_graph=N, out_g_ch=out_g_ch)
    out = jax.block_until_ready(out)

    # Pure-JAX reference with identical numerics (bf16 MXU operands, f32 accumulation).
    def ref_block(adj, xp):
        def gin(h, wa, ba, wb, bb):
            hb = h.astype(jnp.bfloat16)
            agg = jnp.dot(adj, hb, preferred_element_type=jnp.float32)
            z = jnp.dot(agg.astype(jnp.bfloat16), wa, preferred_element_type=jnp.float32) + ba
            z = jnp.maximum(z, 0.0)
            z = jnp.dot(z.astype(jnp.bfloat16), wb, preferred_element_type=jnp.float32) + bb
            return z

        h = xp.astype(jnp.float32)
        h = gin(h, w_slab[0], b_slab[0:1], w_slab[1], b_slab[1:2])
        h = gin(h, w_slab[2], b_slab[2:3], w_slab[3], b_slab[3:4])
        h = gin(h, w_slab[4], b_slab[4:5], w_slab[5], b_slab[5:6])
        return jnp.sum(h.reshape(BG, N, P), axis=1)

    expected = jax.vmap(ref_block)(adj_blocks, x_blocks).reshape(B, P)[:, :out_g_ch]

    assert out.shape == (B, out_g_ch)
    assert jnp.allclose(out, expected, atol=1e-2, rtol=1e-2), float(
        jnp.max(jnp.abs(out - expected))
    )
    print("KERNEL_OK")
</pallas_src>

<mosaic_0001>
module attributes {stable_mosaic.version = 11 : i64} {
  func.func @_graph2vec_kernel(%arg0: i32, %arg1: memref<1x64x64xbf16, #tpu.memory_space<vmem>>, %arg2: memref<1x64x128xbf16, #tpu.memory_space<vmem>>, %arg3: memref<6x128x128xbf16, #tpu.memory_space<vmem>>, %arg4: memref<6x128xf32, #tpu.memory_space<vmem>>, %arg5: memref<1x4x128xf32, #tpu.memory_space<vmem>>) attributes {dimension_semantics = [#tpu.dimension_semantics<parallel>], iteration_bounds = array<i64: 2>, scalar_prefetch = 0 : i64, scratch_operands = 0 : i64, tpu.core_type = #tpu.core_type<tc>, window_params = [{transform_indices = @transform_0, window_bounds = array<i64: 1, 64, 64>}, {transform_indices = @transform_1, window_bounds = array<i64: 1, 64, 128>}, {pipeline_mode = #tpu.pipeline_mode<synchronous>, transform_indices = @transform_2, window_bounds = array<i64: 6, 128, 128>}, {pipeline_mode = #tpu.pipeline_mode<synchronous>, transform_indices = @transform_3, window_bounds = array<i64: 6, 128>}, {transform_indices = @transform_4, window_bounds = array<i64: 1, 4, 128>}]} {
    %c0 = arith.constant 0 : index
    %c0_0 = arith.constant 0 : index
    %c0_1 = arith.constant 0 : index
    %0 = vector.load %arg1[%c0, %c0_0, %c0_1] : memref<1x64x64xbf16, #tpu.memory_space<vmem>>, vector<1x64x64xbf16>
    %1 = vector.shape_cast %0 : vector<1x64x64xbf16> to vector<64x64xbf16>
    %c0_2 = arith.constant 0 : index
    %c0_3 = arith.constant 0 : index
    %c0_4 = arith.constant 0 : index
    %2 = vector.load %arg3[%c0_2, %c0_3, %c0_4] : memref<6x128x128xbf16, #tpu.memory_space<vmem>>, vector<6x128x128xbf16>
    %c0_5 = arith.constant 0 : index
    %c0_6 = arith.constant 0 : index
    %3 = vector.load %arg4[%c0_5, %c0_6] : memref<6x128xf32, #tpu.memory_space<vmem>>, vector<6x128xf32>
    %c0_7 = arith.constant 0 : index
    %c0_8 = arith.constant 0 : index
    %c0_9 = arith.constant 0 : index
    %4 = vector.load %arg2[%c0_7, %c0_8, %c0_9] : memref<1x64x128xbf16, #tpu.memory_space<vmem>>, vector<1x64x128xbf16>
    %5 = vector.shape_cast %4 : vector<1x64x128xbf16> to vector<64x128xbf16>
    %6 = arith.extf %5 : vector<64x128xbf16> to vector<64x128xf32>
    %7 = vector.extract_strided_slice %2 {offsets = [0, 0, 0], sizes = [1, 128, 128], strides = [1, 1, 1]} : vector<6x128x128xbf16> to vector<1x128x128xbf16>
    %8 = vector.shape_cast %7 : vector<1x128x128xbf16> to vector<128x128xbf16>
    %9 = vector.extract_strided_slice %3 {offsets = [0, 0], sizes = [1, 128], strides = [1, 1]} : vector<6x128xf32> to vector<1x128xf32>
    %10 = vector.extract_strided_slice %2 {offsets = [1, 0, 0], sizes = [1, 128, 128], strides = [1, 1, 1]} : vector<6x128x128xbf16> to vector<1x128x128xbf16>
    %11 = vector.shape_cast %10 : vector<1x128x128xbf16> to vector<128x128xbf16>
    %12 = vector.extract_strided_slice %3 {offsets = [1, 0], sizes = [1, 128], strides = [1, 1]} : vector<6x128xf32> to vector<1x128xf32>
    %13 = arith.truncf %6 : vector<64x128xf32> to vector<64x128xbf16>
    %cst = arith.constant dense<0.000000e+00> : vector<64x128xf32>
    %14 = tpu.matmul %1, %13, %cst {dimension_numbers = #tpu.dot_dimension_numbers<[1], [0], [0], [1], [0, 0, 1, 1], [], []>} : vector<64x64xbf16>, vector<64x128xbf16>, vector<64x128xf32> -> vector<64x128xf32>
    %15 = arith.truncf %14 : vector<64x128xf32> to vector<64x128xbf16>
    %cst_10 = arith.constant dense<0.000000e+00> : vector<64x128xf32>
    %16 = tpu.matmul %15, %8, %cst_10 {dimension_numbers = #tpu.dot_dimension_numbers<[1], [0], [0], [1], [0, 0, 1, 1], [], []>} : vector<64x128xbf16>, vector<128x128xbf16>, vector<64x128xf32> -> vector<64x128xf32>
    %17 = vector.broadcast %9 : vector<1x128xf32> to vector<64x128xf32>
    %18 = arith.addf %16, %17 : vector<64x128xf32>
    %cst_11 = arith.constant 0.000000e+00 : f32
    %19 = vector.broadcast %cst_11 : f32 to vector<64x128xf32>
    %20 = arith.maximumf %18, %19 : vector<64x128xf32>
    %21 = arith.truncf %20 : vector<64x128xf32> to vector<64x128xbf16>
    %cst_12 = arith.constant dense<0.000000e+00> : vector<64x128xf32>
    %22 = tpu.matmul %21, %11, %cst_12 {dimension_numbers = #tpu.dot_dimension_numbers<[1], [0], [0], [1], [0, 0, 1, 1], [], []>} : vector<64x128xbf16>, vector<128x128xbf16>, vector<64x128xf32> -> vector<64x128xf32>
    %23 = vector.broadcast %12 : vector<1x128xf32> to vector<64x128xf32>
    %24 = arith.addf %22, %23 : vector<64x128xf32>
    %25 = vector.extract_strided_slice %2 {offsets = [2, 0, 0], sizes = [1, 128, 128], strides = [1, 1, 1]} : vector<6x128x128xbf16> to vector<1x128x128xbf16>
    %26 = vector.shape_cast %25 : vector<1x128x128xbf16> to vector<128x128xbf16>
    %27 = vector.extract_strided_slice %3 {offsets = [2, 0], sizes = [1, 128], strides = [1, 1]} : vector<6x128xf32> to vector<1x128xf32>
    %28 = vector.extract_strided_slice %2 {offsets = [3, 0, 0], sizes = [1, 128, 128], strides = [1, 1, 1]} : vector<6x128x128xbf16> to vector<1x128x128xbf16>
    %29 = vector.shape_cast %28 : vector<1x128x128xbf16> to vector<128x128xbf16>
    %30 = vector.extract_strided_slice %3 {offsets = [3, 0], sizes = [1, 128], strides = [1, 1]} : vector<6x128xf32> to vector<1x128xf32>
    %31 = arith.truncf %24 : vector<64x128xf32> to vector<64x128xbf16>
    %cst_13 = arith.constant dense<0.000000e+00> : vector<64x128xf32>
    %32 = tpu.matmul %1, %31, %cst_13 {dimension_numbers = #tpu.dot_dimension_numbers<[1], [0], [0], [1], [0, 0, 1, 1], [], []>} : vector<64x64xbf16>, vector<64x128xbf16>, vector<64x128xf32> -> vector<64x128xf32>
    %33 = arith.truncf %32 : vector<64x128xf32> to vector<64x128xbf16>
    %cst_14 = arith.constant dense<0.000000e+00> : vector<64x128xf32>
    %34 = tpu.matmul %33, %26, %cst_14 {dimension_numbers = #tpu.dot_dimension_numbers<[1], [0], [0], [1], [0, 0, 1, 1], [], []>} : vector<64x128xbf16>, vector<128x128xbf16>, vector<64x128xf32> -> vector<64x128xf32>
    %35 = vector.broadcast %27 : vector<1x128xf32> to vector<64x128xf32>
    %36 = arith.addf %34, %35 : vector<64x128xf32>
    %cst_15 = arith.constant 0.000000e+00 : f32
    %37 = vector.broadcast %cst_15 : f32 to vector<64x128xf32>
    %38 = arith.maximumf %36, %37 : vector<64x128xf32>
    %39 = arith.truncf %38 : vector<64x128xf32> to vector<64x128xbf16>
    %cst_16 = arith.constant dense<0.000000e+00> : vector<64x128xf32>
    %40 = tpu.matmul %39, %29, %cst_16 {dimension_numbers = #tpu.dot_dimension_numbers<[1], [0], [0], [1], [0, 0, 1, 1], [], []>} : vector<64x128xbf16>, vector<128x128xbf16>, vector<64x128xf32> -> vector<64x128xf32>
    %41 = vector.broadcast %30 : vector<1x128xf32> to vector<64x128xf32>
    %42 = arith.addf %40, %41 : vector<64x128xf32>
    %43 = vector.extract_strided_slice %2 {offsets = [4, 0, 0], sizes = [1, 128, 128], strides = [1, 1, 1]} : vector<6x128x128xbf16> to vector<1x128x128xbf16>
    %44 = vector.shape_cast %43 : vector<1x128x128xbf16> to vector<128x128xbf16>
    %45 = vector.extract_strided_slice %3 {offsets = [4, 0], sizes = [1, 128], strides = [1, 1]} : vector<6x128xf32> to vector<1x128xf32>
    %46 = vector.extract_strided_slice %2 {offsets = [5, 0, 0], sizes = [1, 128, 128], strides = [1, 1, 1]} : vector<6x128x128xbf16> to vector<1x128x128xbf16>
    %47 = vector.shape_cast %46 : vector<1x128x128xbf16> to vector<128x128xbf16>
    %48 = vector.extract_strided_slice %3 {offsets = [5, 0], sizes = [1, 128], strides = [1, 1]} : vector<6x128xf32> to vector<1x128xf32>
    %49 = arith.truncf %42 : vector<64x128xf32> to vector<64x128xbf16>
    %cst_17 = arith.constant dense<0.000000e+00> : vector<64x128xf32>
    %50 = tpu.matmul %1, %49, %cst_17 {dimension_numbers = #tpu.dot_dimension_numbers<[1], [0], [0], [1], [0, 0, 1, 1], [], []>} : vector<64x64xbf16>, vector<64x128xbf16>, vector<64x128xf32> -> vector<64x128xf32>
    %51 = arith.truncf %50 : vector<64x128xf32> to vector<64x128xbf16>
    %cst_18 = arith.constant dense<0.000000e+00> : vector<64x128xf32>
    %52 = tpu.matmul %51, %44, %cst_18 {dimension_numbers = #tpu.dot_dimension_numbers<[1], [0], [0], [1], [0, 0, 1, 1], [], []>} : vector<64x128xbf16>, vector<128x128xbf16>, vector<64x128xf32> -> vector<64x128xf32>
    %53 = vector.broadcast %45 : vector<1x128xf32> to vector<64x128xf32>
    %54 = arith.addf %52, %53 : vector<64x128xf32>
    %cst_19 = arith.constant 0.000000e+00 : f32
    %55 = vector.broadcast %cst_19 : f32 to vector<64x128xf32>
    %56 = arith.maximumf %54, %55 : vector<64x128xf32>
    %57 = arith.truncf %56 : vector<64x128xf32> to vector<64x128xbf16>
    %cst_20 = arith.constant dense<0.000000e+00> : vector<64x128xf32>
    %58 = tpu.matmul %57, %47, %cst_20 {dimension_numbers = #tpu.dot_dimension_numbers<[1], [0], [0], [1], [0, 0, 1, 1], [], []>} : vector<64x128xbf16>, vector<128x128xbf16>, vector<64x128xf32> -> vector<64x128xf32>
    %59 = vector.broadcast %48 : vector<1x128xf32> to vector<64x128xf32>
    %60 = arith.addf %58, %59 : vector<64x128xf32>
    %61 = vector.shape_cast %60 : vector<64x128xf32> to vector<4x16x128xf32>
    %cst_21 = arith.constant dense<0.000000e+00> : vector<4x128xf32>
    %62 = vector.multi_reduction <add>, %61, %cst_21 [1] : vector<4x16x128xf32> to vector<4x128xf32>
    %c0_22 = arith.constant 0 : index
    %c0_23 = arith.constant 0 : index
    %c0_24 = arith.constant 0 : index
    %63 = vector.load %arg5[%c0_22, %c0_23, %c0_24] : memref<1x4x128xf32, #tpu.memory_space<vmem>>, vector<1x4x128xf32>
    %64 = vector.shape_cast %63 : vector<1x4x128xf32> to vector<4x128xf32>
    %65 = vector.shape_cast %62 : vector<4x128xf32> to vector<1x4x128xf32>
    tpu.vector_store %arg5[%c0_22, %c0_23, %c0_24], %65 {strides = array<i32>} : memref<1x4x128xf32, #tpu.memory_space<vmem>>, vector<1x4x128xf32>,
    return
  }
  func.func @transform_0(%arg0: i32) -> (i32, i32, i32) {
    %c0_i32 = arith.constant 0 : i32
    %c0_i32_0 = arith.constant 0 : i32
    %c0_i32_1 = arith.constant 0 : i32
    return %arg0, %c0_i32, %c0_i32_0 : i32, i32, i32
  }
  func.func @transform_1(%arg0: i32) -> (i32, i32, i32) {
    %c0_i32 = arith.constant 0 : i32
    %c0_i32_0 = arith.constant 0 : i32
    %c0_i32_1 = arith.constant 0 : i32
    return %arg0, %c0_i32, %c0_i32_0 : i32, i32, i32
  }
  func.func @transform_2(%arg0: i32) -> (i32, i32, i32) {
    %c0_i32 = arith.constant 0 : i32
    %c0_i32_0 = arith.constant 0 : i32
    %c0_i32_1 = arith.constant 0 : i32
    %c0_i32_2 = arith.constant 0 : i32
    return %c0_i32, %c0_i32_0, %c0_i32_1 : i32, i32, i32
  }
  func.func @transform_3(%arg0: i32) -> (i32, i32) {
    %c0_i32 = arith.constant 0 : i32
    %c0_i32_0 = arith.constant 0 : i32
    %c0_i32_1 = arith.constant 0 : i32
    return %c0_i32, %c0_i32_0 : i32, i32
  }
  func.func @transform_4(%arg0: i32) -> (i32, i32, i32) {
    %c0_i32 = arith.constant 0 : i32
    %c0_i32_0 = arith.constant 0 : i32
    %c0_i32_1 = arith.constant 0 : i32
    return %arg0, %c0_i32, %c0_i32_0 : i32, i32, i32
  }
}

</mosaic_0001>

<bundles_post_ra>
// kernel: tpu_custom_call.1
= control target key start
LH: loop header
LB: loop body
LE: loop exit
PB: predicated region body
PF: predicated region fallthrough
CT: control target
= control target key end

     0   :  { %s2551_s0 = inlined_call_operand.hbm [shape: bf16[2,64,64], index: 0, kind: input, shape index: {}]   ;;  %s2552_s1 = inlined_call_operand.hbm [shape: bf16[2,64,128], index: 1, kind: input, shape index: {}]   ;;  %s2553_s2 = inlined_call_operand.hbm [shape: bf16[6,128,128], index: 2, kind: input, shape index: {}]   ;;  %s2554_s3 = inlined_call_operand.vmem [shape: f32[6,128], index: 3, kind: input, shape index: {}]   ;;  %s2555_s4 = inlined_call_operand.hbm [shape: f32[2,4,128], index: 4, kind: output, shape index: {}]  }
   0x1   :  { %2563 = sst [smem:[#allocation14_spill]] %s2551_s0 }
   0x2   :  { %2564 = sst [smem:[#allocation15_spill]] %s2553_s2 }
   0x3   :  { %9 = vsyncpa [#allocation3], 0 }
   0x4   :  { %11 = vsyncpa [#allocation3 + $0x1], 0 }
   0x5   :  { %12 = vsyncpa [#allocation6], 0 }
   0x6   :  { %14 = vsyncpa [#allocation6 + $0x1], 0 }
   0x7   :  { %15 = vsyncpa [#allocation4], 0 }
   0x8   :  { %17 = vsyncpa [#allocation4 + $0x1], 0  ;;  %s2242_s15 = smov 0   ;;  %s2244_s16 = smov 0  }
   0x9   :  { %s2246_s17 = smov 0   ;;  %s2248_s18 = smov 0  }
   0xa LB: > { %s2263_s19 = sadd.s32 4294967295, %s2209_s18   ;;  %s1550_s20 = sadd.s32 4294967294, %s2209_s18   ;;  %s2209_s18 = sphi %s2248_s18, %s2587_s18   ;;  %s2205_s17 = sphi %s2246_s17, %s2586_s17   ;;  %s2201_s16 = sphi %s2244_s16, %s2585_s16   ;;  %s2197_s15 = sphi %s2242_s15, %s2584_s15  }
   0xb   : > { %p43_p0 = scmp.ne.s32.totalorder %s2201_s16, %s2197_s15  ;;  %p2556_p1 = scmp.eq.s32.totalorder %s2263_s19, 0 }
   0xc   : > { %p141_p3 = scmp.eq.s32.totalorder %s1550_s20, 1  ;;  %p1551_p5 = scmp.ge.s32.totalorder %s2209_s18, 1 }
   0xd   : > { %p2272_p4 = por %p2556_p1, %p43_p0  ;;  %p148_p7 = scmp.lt.s32.totalorder %s2209_s18, 3 }
   0xe   : > { %p2277_p6 = por %p141_p3, %p43_p0  ;;  %s2211_s24 = smov [#allocation7]  }
   0xf   : > { %s2565_s21 = scalar_select %p2272_p4, 1, 0 }
  0x10   : > { %s2566_s22 = scalar_select %p2277_p6, 1, 0 }
  0x11   : > { %p2282_p8 = pnand %p1551_p5, %p148_p7  ;;  %s160_s25 = sshll.u32 %s2211_s24, 4  ;;  %s2286_s25 = int_to_ptr.vmem [resolvable:$true] %s160_s25 }
  0x12   : > { %s2298_s27 = sadd.s32 1, %s2209_s18   ;;  %s30_s28 = sadd.s32 1, %s2205_s17 }
  0x13   : > { %s2567_s23 = scalar_select %p2282_p8, 1, 0 }
  0x14   : > { %p1937_p9 = pneg %p2282_p8  ;;  %s27_s29 = ssub.s32 %s2209_s18, %s2298_s27 }
  0x15   : > { %s2569_s2 = sld [smem:[#allocation15_spill]] }
  0x16   : > { %p2293_p11 = pnand %p1937_p9, %p2556_p1 }
  0x18   : > { %p2049_p13 = pneg %p2293_p11 }
  0x1b   : > { %s2047_s6 = scalar_lea.hbm %s2569_s2, 6144 }
  0x1c   : > { %p2048_p12 = scmp.ne.s32.totalorder %s2569_s2, %s2047_s6  ;;  %p2054_p5 = scmp.lt.u32.totalorder %s2047_s6, %s2569_s2 }
  0x1e   : > { %p2050_p0 = pnand %p2049_p13, %p2048_p12 }
  0x20   : > { %p2051_p3 = pneg %p2050_p0 }
  0x22   : > { %p2056_p7 = pnand %p2054_p5, %p2051_p3 }
  0x24   : > { %2059 = shalt.err (!%p2056_p7)
}
  0x25   : > { %s2060_s11 = scalar_lea.vmem %s2286_s25, 6144  ;;  %p2068_p2 = scmp.lt.s32.totalorder %s2286_s25, %s2286_s25 }
  0x26   : > { %p2061_p9 = scmp.ne.s32.totalorder %s2286_s25, %s2060_s11  ;;  %p2069_p6 = scmp.lt.s32.totalorder %s2060_s11, %s2060_s11 }
  0x28   : > { %p2063_p10 = pnand %p2061_p9, %p2049_p13  ;;  %p2070_p4 = por %p2069_p6, %p2068_p2 }
  0x2a   : > { %p2064_p1 = pneg %p2063_p10 }
  0x2c   : > { %p2071_p8 = pnand %p2070_p4, %p2064_p1 }
  0x2e   : > { %2074 = shalt.err (!%p2071_p8)
}
  0x2f   : > { %s2559_s12 = smov 64   ;;  %s2561_s13 = smov 4  }
  0x30   : > { %1940 = dma.hbm_to_vmem [thread:$0]  (!%p2293_p11), %s2569_s2, 6144, %s2286_s25, [#allocation6], %s2559_s12, %s2559_s12, %s2561_s13  }
  0x31   : > { %p28_p1 = scmp.eq.s32.totalorder %s27_s29, 0  ;;  %p37_p2 = scmp.ne.s32.totalorder %s2205_s17, %s2201_s16 }
  0x32   : > { %p38_p4 = scmp.eq.s32.totalorder %s2209_s18, 0  ;;  %p1953_p6 = scmp.lt.s32.totalorder %s2209_s18, 2 }
  0x33   : > { %s2332_s24 = scalar_select %p28_p1, %s2205_s17, %s30_s28  }
  0x34   : > { %p39_p8 = por %p38_p4, %p37_p2  ;;  %p2571_p10 = scmp.eq.s32.totalorder %s2263_s19, 1 }
  0x35   : > { %2570 = sst [smem:[#allocation13_spill]] %s2332_s24  ;;  %s177_s26 = sand.u32 1, %s2205_s17  }
  0x36   : > { %p2336_p12 = por %p2571_p10, %p37_p2  ;;  %s1637_s5 = sshll.u32 %s2209_s18, 9 }
  0x37   : > { %s2342_s6 = sshll.u32 %s177_s26, 5  ;;  %s2573_s0 = sld [smem:[#allocation14_spill]] }
  0x38   : > { %s181_s28 = scalar_lea.vmem [#allocation2], %s2342_s6  ;;  %p2350_p11 = pnand %p1953_p6, %p39_p8 }
  0x39   : > { %s188_s29 = sshll.u32 %s181_s28, 4  ;;  %s2359_s14 = scalar_lea.hbm %s2552_s1, %s1637_s5  ;;  %s2354_s29 = int_to_ptr.vmem [resolvable:$true] %s188_s29 }
  0x3a   : > { %s2361_s20 = scalar_lea.sflag [#allocation3], %s177_s26  ;;  %p2077_p0 = pneg %p2350_p11 }
  0x3d   : > { %s2347_s25 = scalar_lea.hbm %s2573_s0, %s1637_s5  ;;  %s2080_s12 = scalar_lea.hbm %s2573_s0, 1024 }
  0x3e   : > { %s2075_s7 = scalar_lea.hbm %s2347_s25, 512  ;;  %p2081_p7 = scmp.lt.u32.totalorder %s2347_s25, %s2573_s0 }
  0x3f   : > { %p2076_p13 = scmp.ne.s32.totalorder %s2347_s25, %s2075_s7  ;;  %p2082_p9 = scmp.lt.u32.totalorder %s2080_s12, %s2075_s7 }
  0x40   : > { %p2084_p2 = scmp.lt.u32.totalorder %s2075_s7, %s2347_s25 }
  0x41   : > { %p2078_p3 = pnand %p2077_p0, %p2076_p13  ;;  %p2083_p1 = por %p2082_p9, %p2081_p7 }
  0x43   : > { %p2079_p5 = pneg %p2078_p3  ;;  %p2085_p4 = por %p2084_p2, %p2083_p1 }
  0x45   : > { %p2086_p6 = pnand %p2085_p4, %p2079_p5 }
  0x47   : > { %2089 = shalt.err (!%p2086_p6)
}
  0x48   : > { %s2090_s26 = scalar_lea.vmem %s2354_s29, 512  ;;  %s2214_s5 = smov [#allocation2]  }
  0x49   : > { %p2091_p8 = scmp.ne.s32.totalorder %s2354_s29, %s2090_s26  ;;  %s2095_s10 = sshll.u32 %s2214_s5, 4  ;;  %s2096_s10 = int_to_ptr.vmem [resolvable:$false] %s2095_s10 }
  0x4a   : > { %s2097_s2 = scalar_lea.vmem %s2096_s10, 1024  ;;  %p2098_p3 = scmp.lt.s32.totalorder %s2354_s29, %s2096_s10 }
  0x4b   : > { %p2093_p10 = pnand %p2091_p8, %p2077_p0  ;;  %p2099_p7 = scmp.lt.s32.totalorder %s2097_s2, %s2090_s26 }
  0x4d   : > { %p2094_p13 = pneg %p2093_p10  ;;  %p2100_p9 = por %p2099_p7, %p2098_p3 }
  0x4f   : > { %p2101_p1 = pnand %p2100_p9, %p2094_p13 }
  0x51   : > { %2104 = shalt.err (!%p2101_p1)
}
  0x52   : > { %s2575_s12 = smov 4   ;;  %s2576_s13 = smov 64  }
  0x53   : > { %1944 = dma.hbm_to_vmem [thread:$0]  (!%p2350_p11), %s2347_s25, 512, %s2354_s29, %s2361_s20, %s2576_s13, %s2576_s13, %s2575_s12  }
  0x54   : > { %s202_s11 = scalar_lea.vmem [#allocation5], %s2342_s6  ;;  %s198_s8 = sand.u32 1, %s2209_s18  }
  0x55   : > { %s209_s7 = sshll.u32 %s202_s11, 4  ;;  %s2396_s28 = scalar_lea.sflag [#allocation6], %s198_s8  ;;  %s2394_s7 = int_to_ptr.vmem [resolvable:$true] %s209_s7 }
  0x56   : > { %s2105_s26 = scalar_lea.hbm %s2359_s14, 512  ;;  %s2110_s2 = scalar_lea.hbm %s2552_s1, 1024 }
  0x57   : > { %p2106_p5 = scmp.ne.s32.totalorder %s2359_s14, %s2105_s26  ;;  %p2111_p6 = scmp.lt.u32.totalorder %s2359_s14, %s2552_s1 }
  0x58   : > { %p2112_p8 = scmp.lt.u32.totalorder %s2110_s2, %s2105_s26  ;;  %p2114_p13 = scmp.lt.u32.totalorder %s2105_s26, %s2359_s14 }
  0x59   : > { %p2108_p2 = pnand %p2106_p5, %p2077_p0 }
  0x5a   : > { %p2113_p10 = por %p2112_p8, %p2111_p6 }
  0x5b   : > { %p2109_p4 = pneg %p2108_p2 }
  0x5c   : > { %p2115_p3 = por %p2114_p13, %p2113_p10 }
  0x5e   : > { %p2116_p7 = pnand %p2115_p3, %p2109_p4 }
  0x60   : > { %2119 = shalt.err (!%p2116_p7)
}
  0x61   : > { %s2120_s6 = scalar_lea.vmem %s2394_s7, 512  ;;  %s2215_s25 = smov [#allocation5]  }
  0x62   : > { %p2121_p9 = scmp.ne.s32.totalorder %s2394_s7, %s2120_s6  ;;  %s2125_s29 = sshll.u32 %s2215_s25, 4  ;;  %s2126_s29 = int_to_ptr.vmem [resolvable:$false] %s2125_s29 }
  0x63   : > { %s2127_s0 = scalar_lea.vmem %s2126_s29, 1024  ;;  %p2128_p2 = scmp.lt.s32.totalorder %s2394_s7, %s2126_s29 }
  0x64   : > { %p2123_p1 = pnand %p2121_p9, %p2077_p0  ;;  %p2129_p6 = scmp.lt.s32.totalorder %s2127_s0, %s2120_s6 }
  0x66   : > { %p2124_p5 = pneg %p2123_p1  ;;  %p2130_p8 = por %p2129_p6, %p2128_p2 }
  0x68   : > { %p2131_p10 = pnand %p2130_p8, %p2124_p5 }
  0x6a   : > { %2134 = shalt.err (!%p2131_p10)
}
  0x6b   : > { %1947 = dma.hbm_to_vmem [thread:$0]  (!%p2350_p11), %s2359_s14, 512, %s2394_s7, %s2396_s28, %s2576_s13, %s2576_s13, %s2575_s12  }
  0x6c   : > { %p2577_p0 = scmp.ne.s32.totalorder %s2567_s23, 0 }
  0x6d   : > { %s2428_s24 = sand.u32 (!%p2577_p0), 1, %s2201_s16   ;;  %p2578_p4 = scmp.ne.s32.totalorder (!%p2577_p0), %s2565_s21, 0 }
  0x6e   : > { %221 = sbr.rel (%p2577_p0) target bundleno = 2186 (0x88a), region = 36  ;;  %s1561_s20 = sshll.u32 (!%p2577_p0), %s2428_s24, 5 }
  0x6f   : > { %s224_s11 = scalar_lea.sflag (!%p2577_p0), [#allocation3], %s2428_s24  ;;  %s2432_s8 = scalar_lea.vmem (!%p2577_p0), [#allocation2], %s1561_s20 }
  0x75   : > { %2180 = dma.done.wait (%p2578_p4), %s224_s11, 512  }
  0x76   : > { %2182 = vsyncadd (%p2578_p4), %s224_s11, 4294966784  ;;  %s232_s9 = sand.u32 1, %s2263_s19   ;;  %s236_s14 = scalar_lea.vmem [#allocation5], %s1561_s20 }
  0x77   : > { %s233_s23 = scalar_lea.sflag [#allocation6], %s232_s9 }
  0x78   : > { %2184 = dma.done.wait (%p2578_p4), %s233_s23, 512  }
  0x79   : > { %2186 = vsyncadd (%p2578_p4), %s233_s23, 4294966784  ;;  %p2579_p11 = scmp.eq.s32.totalorder %s2263_s19, 0 }
  0x7b   : > { %2188 = dma.done.wait (%p2579_p11), [#allocation6], 6144   ;;  %p2580_p13 = pmov %p2579_p11 }
  0x7c   : > { %v1991_v0 = vld [vmem:[%s236_s14] sm:$0xff]   ;;  %v1992_v1 = vld [vmem:[%s236_s14 + $0x8] sm:$0xff]   ;;  %v1993_v2 = vld [vmem:[%s236_s14 + $0x10] sm:$0xff]   ;;  %vm428_vm0 = vcmask 523264   ;;  %v510_v36 = vlaneseq  ;;  %vm1426_vm1 = vcmask 1041409   ;;  %s1564_s13 = sshll.u32 %s2428_s24, 2 }
  0x7d   : > { %2190 = vsyncadd (%p2580_p13), [#allocation6], 4294961152  ;;  %1735 = vmatprep.subr.bf16.mxu0 %v1991_v0  ;;  %v2448_v3 = vld [vmem:[%s2432_s8] sm:$0xff]   ;;  %v1994_v4 = vld [vmem:[%s236_s14 + $0x18] sm:$0xff]   ;;  %vm1428_vm2 = vcmask 1042434   ;;  %s1634_s7 = sshll.u32 %s2263_s19, 6 }
  0x7e   : > { %1736 = vmatpush3.bf16.msra.mxu0 %v1991_v0  ;;  %1743 = vmatprep.mubr.msk.bf16.mxu0 %vm428_vm0, %v2448_v3  ;;  %v1999_v5 = vld [vmem:[#allocation7] sm:$0xff]   ;;  %v2000_v6 = vld [vmem:[#allocation7 + $0x8] sm:$0xff]   ;;  %v2001_v8 = vld [vmem:[#allocation7 + $0x10] sm:$0xff]   ;;  %v2469_v37 = vshrl.u32 %v510_v36, 7  ;;  %s269_s28 = scalar_lea.vmem [#allocation8], %s1564_s13  ;;  %vm1430_vm3 = vcmask 1043459   ;;  %s2507_s2 = scalar_lea.hbm %s2555_s4, %s1634_s7 }
  0x7f   : > { %1737 = vmatprep.subr.bf16.mxu0 %v1992_v1  ;;  %1751 = vmatprep.subr.bf16.mxu1 %v1999_v5  ;;  %v2453_v7 = vld [vmem:[%s2432_s8 + $0x8] sm:$0xff]   ;;  %v2456_v9 = vld [vmem:[%s2432_s8 + $0x10] sm:$0xff]   ;;  %v2002_v10 = vld [vmem:[#allocation7 + $0x18] sm:$0xff]   ;;  %s1448_s26 = sshll.u32 %s269_s28, 4  ;;  %s1435_s6 = scalar_lea.sflag [#allocation4], %s2428_s24  ;;  %s2509_s26 = int_to_ptr.vmem [resolvable:$true] %s1448_s26 }
  0x80   : > { %1752 = vmatpush3.bf16.msra.mxu1 %v1999_v5  ;;  %v2003_v11 = vld [vmem:[#allocation7 + $0x20] sm:$0xff]   ;;  %v2463_v12 = vld [vmem:[%s2432_s8 + $0x18] sm:$0xff]   ;;  %v2004_v13 = vld [vmem:[#allocation7 + $0x28] sm:$0xff]   ;;  %v512_v38 = vsub.s32 0, %v2469_v37  ;;  %s2135_s19 = scalar_lea.vmem %s2509_s26, 64  ;;  %s2216_s25 = smov [#allocation8]  }
  0x81   : > { %1753 = vmatprep.subr.bf16.mxu1 %v2000_v6  ;;  %v2005_v14 = vld [vmem:[#allocation7 + $0x30] sm:$0xff]   ;;  %v2006_v15 = vld [vmem:[#allocation7 + $0x38] sm:$0xff]   ;;  %v2007_v16 = vld [vmem:[#allocation7 + $0x40] sm:$0xff]   ;;  %p2136_p3 = scmp.ne.s32.totalorder %s2509_s26, %s2135_s19  ;;  %s2139_s29 = sshll.u32 %s2216_s25, 4  ;;  %s2140_s29 = int_to_ptr.vmem [resolvable:$false] %s2139_s29 }
  0x82   : > { %1738 = vmatpush3.bf16.msra.mxu0 %v1992_v1  ;;  %v2008_v17 = vld [vmem:[#allocation7 + $0x48] sm:$0xff]   ;;  %v2009_v18 = vld [vmem:[#allocation7 + $0x50] sm:$0xff]   ;;  %v2010_v19 = vld [vmem:[#allocation7 + $0x58] sm:$0xff]   ;;  %s2141_s0 = scalar_lea.vmem %s2140_s29, 128  ;;  %p2142_p1 = scmp.lt.s32.totalorder %s2509_s26, %s2140_s29 }
  0x83   : > { %1739 = vmatprep.subr.bf16.mxu0 %v1993_v2  ;;  %v2011_v20 = vld [vmem:[#allocation7 + $0x60] sm:$0xff]   ;;  %v2012_v21 = vld [vmem:[#allocation7 + $0x68] sm:$0xff]   ;;  %v2013_v34 = vld [vmem:[#allocation7 + $0x70] sm:$0xff]   ;;  %p2137_p7 = pnand %p2136_p3, %p2336_p12  ;;  %p2143_p5 = scmp.lt.s32.totalorder %s2141_s0, %s2135_s19 }
  0x84   : > { %1754 = vmatpush3.bf16.msra.mxu1 %v2000_v6  ;;  %v2014_v35 = vld [vmem:[#allocation7 + $0x78] sm:$0xff]   ;;  %v2475_v39 = vld [vmem:[%s2554_s3] sm:$0x3f] }
  0x85   : > { %1755 = vmatprep.subr.bf16.mxu1 %v2001_v8  ;;  %v513_v40 = vrot.slane %v2475_v39, %v512_v38  ;;  %v2015_v6 = vld [vmem:[#allocation7 + $0x80] sm:$0xff]   ;;  %p2138_p9 = pneg %p2137_p7  ;;  %p2144_p2 = por %p2143_p5, %p2142_p1 }
  0x86   : > { %1740 = vmatpush3.bf16.msra.mxu0 %v1993_v2 }
  0x87   : > { %1741 = vmatprep.subr.bf16.mxu0 %v1994_v4  ;;  %p2145_p6 = pnand %p2144_p2, %p2138_p9 }
  0x88   : > { %1756 = vmatpush3.bf16.msra.mxu1 %v2001_v8  ;;  %v2016_v8 = vld [vmem:[#allocation7 + $0x88] sm:$0xff]  }
  0x89   : > { %1757 = vmatprep.subr.bf16.mxu1 %v2002_v10 }
  0x8a   : > { %1742 = vmatpush3.bf16.msra.mxu0 %v1994_v4 }
  0x8b   : > { %1775 = vmatprep.subr.bf16.mxu0 %v2007_v16 }
  0x8c   : > { %1758 = vmatpush3.bf16.msra.mxu1 %v2002_v10  ;;  %v2017_v10 = vld [vmem:[#allocation7 + $0x90] sm:$0xff]  }
  0x8d   : > { %1744 = vmatmul.mubr.msk.bf16.vlgmr.msra.gmra.mrb[0].mxu0 %vm428_vm0, %v2453_v7  ;;  %1759 = vmatprep.subr.bf16.mxu1 %v2003_v11 }
  0x8e   : > { %1747 = vmatprep.mubr.msk.bf16.mxu0 %vm428_vm0, %v2456_v9  ;;  %1776 = vmatpush3.bf16.msra.mxu0 %v2007_v16  ;;  %v641_v16 = vsub.s32 1, %v2469_v37 }
  0x8f   : > { %1777 = vmatprep.subr.bf16.mxu0 %v2008_v17 }
  0x90   : > { %1760 = vmatpush3.bf16.msra.mxu1 %v2003_v11  ;;  %v2018_v11 = vld [vmem:[#allocation7 + $0x98] sm:$0xff]  }
  0x91   : > { %1761 = vmatprep.subr.bf16.mxu1 %v2004_v13 }
  0x92   : > { %1778 = vmatpush3.bf16.msra.mxu0 %v2008_v17  ;;  %v642_v17 = vrot.slane %v2475_v39, %v641_v16 }
  0x93   : > { %1779 = vmatprep.subr.bf16.mxu0 %v2009_v18 }
  0x94   : > { %1762 = vmatpush3.bf16.msra.mxu1 %v2004_v13  ;;  %v2019_v13 = vld [vmem:[#allocation7 + $0xa0] sm:$0xff]  }
  0x95   : > { %1748 = vmatmul.mubr.msk.bf16.gmra.mrb[4].mxu0 %vm428_vm0, %v2463_v12  ;;  %1763 = vmatprep.subr.bf16.mxu1 %v2005_v14 }
  0x96   : > { %1780 = vmatpush3.bf16.msra.mxu0 %v2009_v18 }
  0x97   : > { %1781 = vmatprep.subr.bf16.mxu0 %v2010_v19 }
  0x98   : > { %1764 = vmatpush3.bf16.msra.mxu1 %v2005_v14  ;;  %v2020_v14 = vld [vmem:[#allocation7 + $0xa8] sm:$0xff]  }
  0x99   : > { %1765 = vmatprep.subr.bf16.mxu1 %v2006_v15 }
  0x9a   : > { %1782 = vmatpush3.bf16.msra.mxu0 %v2010_v19 }
  0x9b   : > { %1783 = vmatprep.subr.bf16.mxu0 %v2011_v20 }
  0x9c   : > { %1766 = vmatpush3.bf16.msra.mxu1 %v2006_v15  ;;  %v2021_v15 = vld [vmem:[#allocation7 + $0xb0] sm:$0xff]  }
  0x9e   : > { %1784 = vmatpush3.bf16.msra.mxu0 %v2011_v20 }
  0x9f   : > { %1785 = vmatprep.subr.bf16.mxu0 %v2012_v21 }
  0xa2   : > { %1786 = vmatpush3.bf16.msra.mxu0 %v2012_v21 }
  0xa3   : > { %1787 = vmatprep.subr.bf16.mxu0 %v2013_v34 }
  0xa6   : > { %1788 = vmatpush3.bf16.msra.mxu0 %v2013_v34 }
  0xa7   : > { %1789 = vmatprep.subr.bf16.mxu0 %v2014_v35 }
  0xaa   : > { %1790 = vmatpush3.bf16.msra.mxu0 %v2014_v35 }
  0xab   : > { %1815 = vmatprep.subr.bf16.mxu0 %v2015_v6 }
 0x160   : > { %v1745_v22 = vpop.f32.mrb[0].mxu0 }
 0x161   : > { %v475_v23 = vpop.f32.mrb[1].mxu0 }
 0x162   : > { %v1746_v24 = vpop.f32.mrb[2].mxu0 }
 0x163   : > { %v507_v25 = vpack.c.bf16 %v1746_v24, %v1745_v22  ;;  %v478_v26 = vpop.f32.mrb[3].mxu0 }
 0x164   : > { %v506_v27 = vpack.c.bf16 %v478_v26, %v475_v23 }
 0x166   : > { %1767 = vmatprep.mubr.bf16.mxu1 %v506_v27 }
 0x167   : > { %1768 = vmatmul.mubr.bf16.vlgmr.msra.gmra.mrb[0].mxu1 %v507_v25 }
 0x168   : > { %v1749_v28 = vpop.f32.mrb[4].mxu0 }
 0x169   : > { %v491_v29 = vpop.f32.mrb[5].mxu0 }
 0x16a   : > { %v1750_v30 = vpop.f32.mrb[6].mxu0 }
 0x16b   : > { %v509_v31 = vpack.c.bf16 %v1750_v30, %v1749_v28  ;;  %v494_v32 = vpop.f32.mrb[7].mxu0 }
 0x16c   : > { %v508_v33 = vpack.c.bf16 %v494_v32, %v491_v29 }
 0x16e   : > { %1771 = vmatprep.mubr.bf16.mxu1 %v508_v33 }
 0x16f   : > { %1772 = vmatmul.mubr.bf16.gmra.mrb[4].mxu1 %v509_v31 }
 0x170   : > { %1807 = vmatprep.mubr.msk.bf16.mxu1 %vm428_vm0, %v2448_v3 }
 0x23a   : > { %v1769_v41 = vpop.f32.mrb[0].mxu1 }
 0x23b   : > { %v605_v42 = vadd.f32 %v1769_v41, %v513_v40  ;;  %v596_v43 = vpop.f32.mrb[1].mxu1  ;;  %v2023_v41 = vld [vmem:[#allocation7 + $0xc0] sm:$0xff]  }
 0x23c   : > { %v597_v44 = vadd.f32 %v596_v43, %v513_v40  ;;  %v1770_v45 = vpop.f32.mrb[2].mxu1  ;;  %v2025_v43 = vld [vmem:[#allocation7 + $0xd0] sm:$0xff]  }
 0x23d   : > { %v608_v46 = vadd.f32 %v1770_v45, %v513_v40  ;;  %v599_v47 = vpop.f32.mrb[3].mxu1  ;;  %v629_v49 = vmax.f32 %v605_v42, 0.0  ;;  %v2024_v42 = vld [vmem:[#allocation7 + $0xc8] sm:$0xff]   ;;  %v2027_v45 = vld [vmem:[#allocation7 + $0xe0] sm:$0xff]  }
 0x23e   : > { %v600_v48 = vadd.f32 %v599_v47, %v513_v40  ;;  %v627_v51 = vmax.f32 %v597_v44, 0.0  ;;  %v2026_v44 = vld [vmem:[#allocation7 + $0xd8] sm:$0xff]  }
 0x23f   : > { %v630_v50 = vmax.f32 %v608_v46, 0.0  ;;  %v2028_v46 = vld [vmem:[#allocation7 + $0xe8] sm:$0xff]  }
 0x240   : > { %v628_v52 = vmax.f32 %v600_v48, 0.0 }
 0x241   : > { %v636_v53 = vpack.c.bf16 %v630_v50, %v629_v49 }
 0x242   : > { %v635_v54 = vpack.c.bf16 %v628_v52, %v627_v51  ;;  %v1773_v55 = vpop.f32.mrb[4].mxu1 }
 0x243   : > { %v621_v56 = vadd.f32 %v1773_v55, %v513_v40  ;;  %v612_v57 = vpop.f32.mrb[5].mxu1 }
 0x244   : > { %v613_v58 = vadd.f32 %v612_v57, %v513_v40  ;;  %v1774_v59 = vpop.f32.mrb[6].mxu1  ;;  %1791 = vmatprep.mubr.bf16.mxu0 %v635_v54 }
 0x245   : > { %v624_v60 = vadd.f32 %v1774_v59, %v513_v40  ;;  %v615_v61 = vpop.f32.mrb[7].mxu1  ;;  %1792 = vmatmul.mubr.bf16.vlgmr.msra.gmra.mrb[8].mxu0 %v636_v53  ;;  %v633_v63 = vmax.f32 %v621_v56, 0.0  ;;  %v2029_v59 = vld [vmem:[#allocation7 + $0xf0] sm:$0xff]  }
 0x246   : > { %v616_v62 = vadd.f32 %v615_v61, %v513_v40  ;;  %v631_v1 = vmax.f32 %v613_v58, 0.0  ;;  %1816 = vmatpush3.bf16.msra.mxu0 %v2015_v6  ;;  %v2022_v40 = vld [vmem:[#allocation7 + $0xb8] sm:$0xff]   ;;  %v831_v61 = vsub.s32 2, %v2469_v37 }
 0x247   : > { %v634_v0 = vmax.f32 %v624_v60, 0.0  ;;  %1817 = vmatprep.subr.bf16.mxu0 %v2016_v8  ;;  %v2030_v60 = vld [vmem:[#allocation7 + $0xf8] sm:$0xff]  }
 0x248   : > { %v632_v2 = vmax.f32 %v616_v62, 0.0  ;;  %v832_v62 = vrot.slane %v2475_v39, %v831_v61  ;;  %v2038_v61 = vld [vmem:[#allocation7 + $0x138] sm:$0xff]  }
 0x249   : > { %v638_v4 = vpack.c.bf16 %v634_v0, %v633_v63 }
 0x24a   : > { %v637_v5 = vpack.c.bf16 %v632_v2, %v631_v1  ;;  %1818 = vmatpush3.bf16.msra.mxu0 %v2016_v8 }
 0x24b   : > { %1819 = vmatprep.subr.bf16.mxu0 %v2017_v10 }
 0x24c   : > { %1795 = vmatprep.mubr.bf16.mxu0 %v637_v5 }
 0x24d   : > { %1796 = vmatmul.mubr.bf16.gmra.mrb[12].mxu0 %v638_v4 }
 0x24e   : > { %1820 = vmatpush3.bf16.msra.mxu0 %v2017_v10 }
 0x24f   : > { %1821 = vmatprep.subr.bf16.mxu0 %v2018_v11 }
 0x252   : > { %1822 = vmatpush3.bf16.msra.mxu0 %v2018_v11 }
 0x253   : > { %1823 = vmatprep.subr.bf16.mxu0 %v2019_v13 }
 0x256   : > { %1824 = vmatpush3.bf16.msra.mxu0 %v2019_v13 }
 0x257   : > { %1825 = vmatprep.subr.bf16.mxu0 %v2020_v14 }
 0x25a   : > { %1826 = vmatpush3.bf16.msra.mxu0 %v2020_v14 }
 0x25b   : > { %1827 = vmatprep.subr.bf16.mxu0 %v2021_v15 }
 0x25e   : > { %1828 = vmatpush3.bf16.msra.mxu0 %v2021_v15 }
 0x25f   : > { %1829 = vmatprep.subr.bf16.mxu0 %v2022_v40 }
 0x262   : > { %1830 = vmatpush3.bf16.msra.mxu0 %v2022_v40 }
 0x318   : > { %v1793_v18 = vpop.f32.mrb[8].mxu0 }
 0x319   : > { %v725_v19 = vpop.f32.mrb[9].mxu0  ;;  %v734_v21 = vadd.f32 %v1793_v18, %v642_v17 }
 0x31a   : > { %v1794_v20 = vpop.f32.mrb[10].mxu0  ;;  %v726_v24 = vadd.f32 %v725_v19, %v642_v17 }
 0x31b   : > { %v737_v22 = vadd.f32 %v1794_v20, %v642_v17  ;;  %v728_v23 = vpop.f32.mrb[11].mxu0 }
 0x31c   : > { %v729_v25 = vadd.f32 %v728_v23, %v642_v17 }
 0x31d   : > { %v757_v26 = vpack.c.bf16 %v737_v22, %v734_v21 }
 0x31e   : > { %v756_v27 = vpack.c.bf16 %v729_v25, %v726_v24 }
 0x320   : > { %v1797_v28 = vpop.f32.mrb[12].mxu0  ;;  %1799 = vmatprep.subr.bf16.mxu1 %v756_v27 }
 0x321   : > { %v741_v29 = vpop.f32.mrb[13].mxu0  ;;  %1800 = vmatpush3.bf16.msra.mxu1 %v756_v27  ;;  %v750_v31 = vadd.f32 %v1797_v28, %v642_v17 }
 0x322   : > { %v1798_v30 = vpop.f32.mrb[14].mxu0  ;;  %1801 = vmatprep.subr.bf16.mxu1 %v757_v26  ;;  %v742_v34 = vadd.f32 %v741_v29, %v642_v17 }
 0x323   : > { %v753_v32 = vadd.f32 %v1798_v30, %v642_v17  ;;  %v744_v33 = vpop.f32.mrb[15].mxu0  ;;  %v2031_v30 = vld [vmem:[#allocation7 + $0x100] sm:$0xff]  }
 0x324   : > { %v745_v35 = vadd.f32 %v744_v33, %v642_v17  ;;  %v2034_v33 = vld [vmem:[#allocation7 + $0x118] sm:$0xff]  }
 0x325   : > { %v759_v36 = vpack.c.bf16 %v753_v32, %v750_v31  ;;  %1802 = vmatpush3.bf16.msra.mxu1 %v757_v26  ;;  %v2032_v31 = vld [vmem:[#allocation7 + $0x108] sm:$0xff]   ;;  %v2033_v32 = vld [vmem:[#allocation7 + $0x110] sm:$0xff]  }
 0x326   : > { %v758_v38 = vpack.c.bf16 %v745_v35, %v742_v34  ;;  %v2035_v34 = vld [vmem:[#allocation7 + $0x120] sm:$0xff]   ;;  %v2036_v35 = vld [vmem:[#allocation7 + $0x128] sm:$0xff]  }
 0x328   : > { %1803 = vmatprep.subr.bf16.mxu1 %v758_v38 }
 0x329   : > { %1804 = vmatpush3.bf16.msra.mxu1 %v758_v38  ;;  %v960_v38 = vsub.s32 3, %v2469_v37 }
 0x32a   : > { %1805 = vmatprep.subr.bf16.mxu1 %v759_v36 }
 0x32b   : > { %v961_v40 = vrot.slane %v2475_v39, %v960_v38 }
 0x32d   : > { %1806 = vmatpush3.bf16.msra.mxu1 %v759_v36  ;;  %v2037_v36 = vld [vmem:[#allocation7 + $0x130] sm:$0xff]  }
 0x32e   : > { %1839 = vmatprep.subr.bf16.mxu1 %v2023_v41 }
 0x330   : > { %1808 = vmatmul.mubr.msk.bf16.vlgmr.msra.gmra.mrb[8].mxu1 %vm428_vm0, %v2453_v7 }
 0x331   : > { %1811 = vmatprep.mubr.msk.bf16.mxu1 %vm428_vm0, %v2456_v9  ;;  %1840 = vmatpush3.bf16.msra.mxu1 %v2023_v41 }
 0x332   : > { %1841 = vmatprep.subr.bf16.mxu1 %v2024_v42 }
 0x335   : > { %1842 = vmatpush3.bf16.msra.mxu1 %v2024_v42 }
 0x336   : > { %1843 = vmatprep.subr.bf16.mxu1 %v2025_v43 }
 0x338   : > { %1812 = vmatmul.mubr.msk.bf16.gmra.mrb[12].mxu1 %vm428_vm0, %v2463_v12 }
 0x339   : > { %1844 = vmatpush3.bf16.msra.mxu1 %v2025_v43 }
 0x33a   : > { %1845 = vmatprep.subr.bf16.mxu1 %v2026_v44 }
 0x33d   : > { %1846 = vmatpush3.bf16.msra.mxu1 %v2026_v44 }
 0x33e   : > { %1847 = vmatprep.subr.bf16.mxu1 %v2027_v45 }
 0x341   : > { %1848 = vmatpush3.bf16.msra.mxu1 %v2027_v45 }
 0x342   : > { %1849 = vmatprep.subr.bf16.mxu1 %v2028_v46 }
 0x345   : > { %1850 = vmatpush3.bf16.msra.mxu1 %v2028_v46 }
 0x346   : > { %1851 = vmatprep.subr.bf16.mxu1 %v2029_v59 }
 0x349   : > { %1852 = vmatpush3.bf16.msra.mxu1 %v2029_v59 }
 0x34a   : > { %1853 = vmatprep.subr.bf16.mxu1 %v2030_v60 }
 0x34d   : > { %1854 = vmatpush3.bf16.msra.mxu1 %v2030_v60 }
 0x34e   : > { %1879 = vmatprep.subr.bf16.mxu1 %v2031_v30 }
 0x403   : > { %v1809_v47 = vpop.f32.mrb[8].mxu1 }
 0x404   : > { %v794_v48 = vpop.f32.mrb[9].mxu1 }
 0x405   : > { %v1810_v49 = vpop.f32.mrb[10].mxu1 }
 0x406   : > { %v826_v50 = vpack.c.bf16 %v1810_v49, %v1809_v47  ;;  %v797_v51 = vpop.f32.mrb[11].mxu1 }
 0x407   : > { %v825_v52 = vpack.c.bf16 %v797_v51, %v794_v48 }
 0x409   : > { %1831 = vmatprep.mubr.bf16.mxu0 %v825_v52 }
 0x40a   : > { %1832 = vmatmul.mubr.bf16.vlgmr.msra.gmra.mrb[16].mxu0 %v826_v50 }
 0x40b   : > { %v1813_v53 = vpop.f32.mrb[12].mxu1 }
 0x40c   : > { %v810_v54 = vpop.f32.mrb[13].mxu1 }
 0x40d   : > { %v1814_v55 = vpop.f32.mrb[14].mxu1 }
 0x40e   : > { %v828_v56 = vpack.c.bf16 %v1814_v55, %v1813_v53  ;;  %v813_v57 = vpop.f32.mrb[15].mxu1 }
 0x40f   : > { %v827_v58 = vpack.c.bf16 %v813_v57, %v810_v54 }
 0x411   : > { %1835 = vmatprep.mubr.bf16.mxu0 %v827_v58 }
 0x412   : > { %1836 = vmatmul.mubr.bf16.gmra.mrb[20].mxu0 %v828_v56 }
 0x413   : > { %1871 = vmatprep.mubr.msk.bf16.mxu0 %vm428_vm0, %v2448_v3 }
 0x4dd   : > { %v1833_v63 = vpop.f32.mrb[16].mxu0 }
 0x4de   : > { %v924_v0 = vadd.f32 %v1833_v63, %v832_v62  ;;  %v915_v1 = vpop.f32.mrb[17].mxu0  ;;  %v2040_v63 = vld [vmem:[#allocation7 + $0x148] sm:$0xff]  }
 0x4df   : > { %v916_v2 = vadd.f32 %v915_v1, %v832_v62  ;;  %v1834_v4 = vpop.f32.mrb[18].mxu0  ;;  %v2042_v1 = vld [vmem:[#allocation7 + $0x158] sm:$0xff]  }
 0x4e0   : > { %v927_v5 = vadd.f32 %v1834_v4, %v832_v62  ;;  %v918_v6 = vpop.f32.mrb[19].mxu0  ;;  %v948_v10 = vmax.f32 %v924_v0, 0.0  ;;  %v2041_v0 = vld [vmem:[#allocation7 + $0x150] sm:$0xff]  }
 0x4e1   : > { %v919_v8 = vadd.f32 %v918_v6, %v832_v62  ;;  %v946_v11 = vmax.f32 %v916_v2, 0.0 }
 0x4e2   : > { %v949_v3 = vmax.f32 %v927_v5, 0.0 }
 0x4e3   : > { %v947_v13 = vmax.f32 %v919_v8, 0.0 }
 0x4e4   : > { %v955_v14 = vpack.c.bf16 %v949_v3, %v948_v10 }
 0x4e5   : > { %v954_v15 = vpack.c.bf16 %v947_v13, %v946_v11  ;;  %v1837_v16 = vpop.f32.mrb[20].mxu0 }
 0x4e6   : > { %v940_v17 = vadd.f32 %v1837_v16, %v832_v62  ;;  %v931_v18 = vpop.f32.mrb[21].mxu0  ;;  %v2045_v16 = vld [vmem:[#allocation7 + $0x170] sm:$0xff]  }
 0x4e7   : > { %v932_v19 = vadd.f32 %v931_v18, %v832_v62  ;;  %v1838_v20 = vpop.f32.mrb[22].mxu0  ;;  %1855 = vmatprep.mubr.bf16.mxu1 %v954_v15  ;;  %v1150_v18 = vsub.s32 4, %v2469_v37 }
 0x4e8   : > { %v943_v21 = vadd.f32 %v1838_v20, %v832_v62  ;;  %v934_v22 = vpop.f32.mrb[23].mxu0  ;;  %1856 = vmatmul.mubr.bf16.vlgmr.msra.gmra.mrb[16].mxu1 %v955_v14  ;;  %v952_v24 = vmax.f32 %v940_v17, 0.0  ;;  %v2046_v17 = vld [vmem:[#allocation7 + $0x178] sm:$0xff]  }
 0x4e9   : > { %v935_v23 = vadd.f32 %v934_v22, %v832_v62  ;;  %v950_v26 = vmax.f32 %v932_v19, 0.0  ;;  %1880 = vmatpush3.bf16.msra.mxu1 %v2031_v30  ;;  %v2039_v62 = vld [vmem:[#allocation7 + $0x140] sm:$0xff]   ;;  %v1151_v19 = vrot.slane %v2475_v39, %v1150_v18 }
 0x4ea   : > { %v953_v25 = vmax.f32 %v943_v21, 0.0  ;;  %1881 = vmatprep.subr.bf16.mxu1 %v2032_v31 }
 0x4eb   : > { %v951_v27 = vmax.f32 %v935_v23, 0.0 }
 0x4ec   : > { %v957_v28 = vpack.c.bf16 %v953_v25, %v952_v24 }
 0x4ed   : > { %v956_v29 = vpack.c.bf16 %v951_v27, %v950_v26  ;;  %1882 = vmatpush3.bf16.msra.mxu1 %v2032_v31 }
 0x4ee   : > { %1883 = vmatprep.subr.bf16.mxu1 %v2033_v32 }
 0x4ef   : > { %1859 = vmatprep.mubr.bf16.mxu1 %v956_v29 }
 0x4f0   : > { %1860 = vmatmul.mubr.bf16.gmra.mrb[20].mxu1 %v957_v28 }
 0x4f1   : > { %1884 = vmatpush3.bf16.msra.mxu1 %v2033_v32 }
 0x4f2   : > { %1885 = vmatprep.subr.bf16.mxu1 %v2034_v33 }
 0x4f5   : > { %1886 = vmatpush3.bf16.msra.mxu1 %v2034_v33 }
 0x4f6   : > { %1887 = vmatprep.subr.bf16.mxu1 %v2035_v34 }
 0x4f9   : > { %1888 = vmatpush3.bf16.msra.mxu1 %v2035_v34 }
 0x4fa   : > { %1889 = vmatprep.subr.bf16.mxu1 %v2036_v35 }
 0x4fd   : > { %1890 = vmatpush3.bf16.msra.mxu1 %v2036_v35 }
 0x4fe   : > { %1891 = vmatprep.subr.bf16.mxu1 %v2037_v36 }
 0x501   : > { %1892 = vmatpush3.bf16.msra.mxu1 %v2037_v36 }
 0x502   : > { %1893 = vmatprep.subr.bf16.mxu1 %v2038_v61 }
 0x505   : > { %1894 = vmatpush3.bf16.msra.mxu1 %v2038_v61 }
 0x5bb   : > { %v1857_v41 = vpop.f32.mrb[16].mxu1 }
 0x5bc   : > { %v1044_v42 = vpop.f32.mrb[17].mxu1  ;;  %v1053_v44 = vadd.f32 %v1857_v41, %v961_v40 }
 0x5bd   : > { %v1858_v43 = vpop.f32.mrb[18].mxu1  ;;  %v1045_v47 = vadd.f32 %v1044_v42, %v961_v40 }
 0x5be   : > { %v1056_v45 = vadd.f32 %v1858_v43, %v961_v40  ;;  %v1047_v46 = vpop.f32.mrb[19].mxu1 }
 0x5bf   : > { %v1048_v48 = vadd.f32 %v1047_v46, %v961_v40 }
 0x5c0   : > { %v1076_v49 = vpack.c.bf16 %v1056_v45, %v1053_v44 }
 0x5c1   : > { %v1075_v50 = vpack.c.bf16 %v1048_v48, %v1045_v47 }
 0x5c3   : > { %v1861_v51 = vpop.f32.mrb[20].mxu1  ;;  %1863 = vmatprep.subr.bf16.mxu0 %v1075_v50 }
 0x5c4   : > { %v1060_v52 = vpop.f32.mrb[21].mxu1  ;;  %1864 = vmatpush3.bf16.msra.mxu0 %v1075_v50  ;;  %v1069_v54 = vadd.f32 %v1861_v51, %v961_v40  ;;  %v1279_v50 = vsub.s32 5, %v2469_v37 }
 0x5c5   : > { %v1862_v53 = vpop.f32.mrb[22].mxu1  ;;  %1865 = vmatprep.subr.bf16.mxu0 %v1076_v49  ;;  %v1061_v57 = vadd.f32 %v1060_v52, %v961_v40 }
 0x5c6   : > { %v1072_v55 = vadd.f32 %v1862_v53, %v961_v40  ;;  %v1063_v56 = vpop.f32.mrb[23].mxu1  ;;  %v1280_v51 = vrot.slane %v2475_v39, %v1279_v50 }
 0x5c7   : > { %v1064_v58 = vadd.f32 %v1063_v56, %v961_v40 }
 0x5c8   : > { %v1078_v59 = vpack.c.bf16 %v1072_v55, %v1069_v54  ;;  %1866 = vmatpush3.bf16.msra.mxu0 %v1076_v49 }
 0x5c9   : > { %v1077_v60 = vpack.c.bf16 %v1064_v58, %v1061_v57 }
 0x5cb   : > { %1867 = vmatprep.subr.bf16.mxu0 %v1077_v60 }
 0x5cc   : > { %1868 = vmatpush3.bf16.msra.mxu0 %v1077_v60 }
 0x5cd   : > { %1869 = vmatprep.subr.bf16.mxu0 %v1078_v59 }
 0x5d0   : > { %1870 = vmatpush3.bf16.msra.mxu0 %v1078_v59 }
 0x5d1   : > { %1903 = vmatprep.subr.bf16.mxu0 %v2039_v62 }
 0x5d3   : > { %1872 = vmatmul.mubr.msk.bf16.vlgmr.msra.gmra.mrb[24].mxu0 %vm428_vm0, %v2453_v7  ;;  %v2043_v7 = vld [vmem:[#allocation7 + $0x160] sm:$0xff]  }
 0x5d4   : > { %1875 = vmatprep.mubr.msk.bf16.mxu0 %vm428_vm0, %v2456_v9  ;;  %1904 = vmatpush3.bf16.msra.mxu0 %v2039_v62  ;;  %v2044_v9 = vld [vmem:[#allocation7 + $0x168] sm:$0xff]  }
 0x5d5   : > { %1905 = vmatprep.subr.bf16.mxu0 %v2040_v63 }
 0x5d8   : > { %1906 = vmatpush3.bf16.msra.mxu0 %v2040_v63 }
 0x5d9   : > { %1907 = vmatprep.subr.bf16.mxu0 %v2041_v0 }
 0x5db   : > { %1876 = vmatmul.mubr.msk.bf16.gmra.mrb[28].mxu0 %vm428_vm0, %v2463_v12 }
 0x5dc   : > { %1908 = vmatpush3.bf16.msra.mxu0 %v2041_v0 }
 0x5dd   : > { %1909 = vmatprep.subr.bf16.mxu0 %v2042_v1 }
 0x5e0   : > { %1910 = vmatpush3.bf16.msra.mxu0 %v2042_v1 }
 0x5e1   : > { %1911 = vmatprep.subr.bf16.mxu0 %v2043_v7 }
 0x5e4   : > { %1912 = vmatpush3.bf16.msra.mxu0 %v2043_v7 }
 0x5e5   : > { %1913 = vmatprep.subr.bf16.mxu0 %v2044_v9 }
 0x5e8   : > { %1914 = vmatpush3.bf16.msra.mxu0 %v2044_v9 }
 0x5e9   : > { %1915 = vmatprep.subr.bf16.mxu0 %v2045_v16 }
 0x5ec   : > { %1916 = vmatpush3.bf16.msra.mxu0 %v2045_v16 }
 0x5ed   : > { %1917 = vmatprep.subr.bf16.mxu0 %v2046_v17 }
 0x5f0   : > { %1918 = vmatpush3.bf16.msra.mxu0 %v2046_v17 }
 0x6a6   : > { %v1873_v12 = vpop.f32.mrb[24].mxu0 }
 0x6a7   : > { %v1113_v2 = vpop.f32.mrb[25].mxu0 }
 0x6a8   : > { %v1874_v4 = vpop.f32.mrb[26].mxu0 }
 0x6a9   : > { %v1145_v5 = vpack.c.bf16 %v1874_v4, %v1873_v12  ;;  %v1116_v6 = vpop.f32.mrb[27].mxu0 }
 0x6aa   : > { %v1144_v8 = vpack.c.bf16 %v1116_v6, %v1113_v2 }
 0x6ac   : > { %1895 = vmatprep.mubr.bf16.mxu1 %v1144_v8 }
 0x6ad   : > { %1896 = vmatmul.mubr.bf16.vlgmr.msra.gmra.mrb[24].mxu1 %v1145_v5 }
 0x6ae   : > { %v1877_v10 = vpop.f32.mrb[28].mxu0 }
 0x6af   : > { %v1129_v3 = vpop.f32.mrb[29].mxu0 }
 0x6b0   : > { %v1878_v11 = vpop.f32.mrb[30].mxu0 }
 0x6b1   : > { %v1147_v13 = vpack.c.bf16 %v1878_v11, %v1877_v10  ;;  %v1132_v14 = vpop.f32.mrb[31].mxu0 }
 0x6b2   : > { %v1146_v15 = vpack.c.bf16 %v1132_v14, %v1129_v3 }
 0x6b4   : > { %1899 = vmatprep.mubr.bf16.mxu1 %v1146_v15 }
 0x6b5   : > { %1900 = vmatmul.mubr.bf16.gmra.mrb[28].mxu1 %v1147_v13 }
 0x780   : > { %v1897_v20 = vpop.f32.mrb[24].mxu1 }
 0x781   : > { %v1243_v21 = vadd.f32 %v1897_v20, %v1151_v19  ;;  %v1234_v22 = vpop.f32.mrb[25].mxu1 }
 0x782   : > { %v1235_v23 = vadd.f32 %v1234_v22, %v1151_v19  ;;  %v1898_v24 = vpop.f32.mrb[26].mxu1 }
 0x783   : > { %v1246_v25 = vadd.f32 %v1898_v24, %v1151_v19  ;;  %v1237_v26 = vpop.f32.mrb[27].mxu1  ;;  %v1267_v28 = vmax.f32 %v1243_v21, 0.0 }
 0x784   : > { %v1238_v27 = vadd.f32 %v1237_v26, %v1151_v19  ;;  %v1265_v30 = vmax.f32 %v1235_v23, 0.0 }
 0x785   : > { %v1268_v29 = vmax.f32 %v1246_v25, 0.0 }
 0x786   : > { %v1266_v31 = vmax.f32 %v1238_v27, 0.0 }
 0x787   : > { %v1274_v32 = vpack.c.bf16 %v1268_v29, %v1267_v28 }
 0x788   : > { %v1273_v33 = vpack.c.bf16 %v1266_v31, %v1265_v30  ;;  %v1901_v34 = vpop.f32.mrb[28].mxu1 }
 0x789   : > { %v1259_v35 = vadd.f32 %v1901_v34, %v1151_v19  ;;  %v1250_v36 = vpop.f32.mrb[29].mxu1 }
 0x78a   : > { %v1251_v38 = vadd.f32 %v1250_v36, %v1151_v19  ;;  %v1902_v40 = vpop.f32.mrb[30].mxu1  ;;  %1919 = vmatprep.mubr.bf16.mxu0 %v1273_v33 }
 0x78b   : > { %v1262_v41 = vadd.f32 %v1902_v40, %v1151_v19  ;;  %v1253_v42 = vpop.f32.mrb[31].mxu1  ;;  %1920 = vmatmul.mubr.bf16.vlgmr.msra.gmra.mrb[32].mxu0 %v1274_v32  ;;  %v1271_v44 = vmax.f32 %v1259_v35, 0.0 }
 0x78c   : > { %v1254_v43 = vadd.f32 %v1253_v42, %v1151_v19  ;;  %v1269_v46 = vmax.f32 %v1251_v38, 0.0 }
 0x78d   : > { %v1272_v45 = vmax.f32 %v1262_v41, 0.0 }
 0x78e   : > { %v1270_v47 = vmax.f32 %v1254_v43, 0.0 }
 0x78f   : > { %v1276_v48 = vpack.c.bf16 %v1272_v45, %v1271_v44 }
 0x790   : > { %v1275_v49 = vpack.c.bf16 %v1270_v47, %v1269_v46 }
 0x792   : > { %1923 = vmatprep.mubr.bf16.mxu0 %v1275_v49 }
 0x793   : > { %1924 = vmatmul.mubr.bf16.gmra.mrb[36].mxu0 %v1276_v48 }
 0x85e   : > { %v1921_v52 = vpop.f32.mrb[32].mxu0 }
 0x85f   : > { %v1363_v53 = vpop.f32.mrb[33].mxu0  ;;  %v1372_v55 = vadd.f32 %v1921_v52, %v1280_v51 }
 0x860   : > { %v1922_v54 = vpop.f32.mrb[34].mxu0  ;;  %v1364_v58 = vadd.f32 %v1363_v53, %v1280_v51 }
 0x861   : > { %v1375_v56 = vadd.f32 %v1922_v54, %v1280_v51  ;;  %v1366_v57 = vpop.f32.mrb[35].mxu0 }
 0x862   : > { %v1367_v59 = vadd.f32 %v1366_v57, %v1280_v51 }
 0x863   : > { %v1401_v60 = vadd.f32 %v1375_v56, %v1372_v55 }
 0x864   : > { %v1394_v61 = vadd.f32 %v1367_v59, %v1364_v58 }
 0x865   : > { %v1402_v62 = vrot.slane %v1401_v60, 4 }
 0x866   : > { %v1395_v63 = vrot.slane %v1394_v61, 4  ;;  %v1925_v0 = vpop.f32.mrb[36].mxu0 }
 0x867   : > { %v1403_v1 = vadd.f32 %v1402_v62, %v1401_v60  ;;  %v1379_v7 = vpop.f32.mrb[37].mxu0  ;;  %v1388_v2 = vadd.f32 %v1925_v0, %v1280_v51 }
 0x868   : > { %v1396_v9 = vadd.f32 %v1395_v63, %v1394_v61  ;;  %v1926_v12 = vpop.f32.mrb[38].mxu0  ;;  %v1380_v6 = vadd.f32 %v1379_v7, %v1280_v51 }
 0x869   : > { %v1404_v37 = vrot.slane %v1403_v1, 2  ;;  %v1391_v39 = vadd.f32 %v1926_v12, %v1280_v51  ;;  %v1382_v4 = vpop.f32.mrb[39].mxu0 }
 0x86a   : > { %v1397_v5 = vrot.slane %v1396_v9, 2  ;;  %v1383_v8 = vadd.f32 %v1382_v4, %v1280_v51 }
 0x86b   : > { %v1405_v10 = vadd.f32 %v1404_v37, %v1403_v1  ;;  %v1415_v3 = vadd.f32 %v1391_v39, %v1388_v2 }
 0x86c   : > { %v1398_v11 = vadd.f32 %v1397_v5, %v1396_v9  ;;  %v1408_v13 = vadd.f32 %v1383_v8, %v1380_v6 }
 0x86d   : > { %v1406_v14 = vrot.slane %v1405_v10, 1  ;;  %v1416_v15 = vrot.slane %v1415_v3, 4 }
 0x86e   : > { %v1399_v16 = vrot.slane %v1398_v11, 1  ;;  %v1409_v17 = vrot.slane %v1408_v13, 4 }
 0x86f   : > { %v1407_v18 = vadd.f32 %v1406_v14, %v1405_v10  ;;  %v1417_v19 = vadd.f32 %v1416_v15, %v1415_v3 }
 0x870   : > { %v1400_v20 = vadd.f32 %v1399_v16, %v1398_v11  ;;  %v1410_v21 = vadd.f32 %v1409_v17, %v1408_v13 }
 0x871   : > { %v1418_v22 = vrot.slane %v1417_v19, 2 }
 0x872   : > { %v1411_v23 = vrot.slane %v1410_v21, 2  ;;  %v1427_v24 = vsel %vm1426_vm1, %v1407_v18, %v1400_v20 }
 0x873   : > { %v1419_v25 = vadd.f32 %v1418_v22, %v1417_v19 }
 0x874   : > { %v1412_v26 = vadd.f32 %v1411_v23, %v1410_v21 }
 0x875   : > { %v1420_v27 = vrot.slane %v1419_v25, 1 }
 0x876   : > { %v1413_v28 = vrot.slane %v1412_v26, 1 }
 0x877   : > { %v1421_v30 = vadd.f32 %v1420_v27, %v1419_v25 }
 0x878   : > { %v1414_v29 = vadd.f32 %v1413_v28, %v1412_v26 }
 0x87a   : > { %v1429_v31 = vsel %vm1428_vm2, %v1414_v29, %v1427_v24 }
 0x87b   : > { %v1431_v32 = vsel %vm1430_vm3, %v1421_v30, %v1429_v31 }
 0x87c   : > { %1433 = vst [vmem:[%s269_s28] sm:$0xf] %v1431_v32 }
 0x87d   : > { %2148 = shalt.err (!%p2145_p6)
}
 0x87e   : > { %s2149_s24 = scalar_lea.hbm %s2507_s2, 64  ;;  %s2153_s8 = scalar_lea.hbm %s2555_s4, 128 }
 0x87f   : > { %p2150_p8 = scmp.ne.s32.totalorder %s2507_s2, %s2149_s24  ;;  %p2154_p4 = scmp.lt.u32.totalorder %s2507_s2, %s2555_s4 }
 0x880   : > { %p2155_p11 = scmp.lt.u32.totalorder %s2153_s8, %s2149_s24  ;;  %p2157_p3 = scmp.lt.u32.totalorder %s2149_s24, %s2507_s2 }
 0x881   : > { %p2151_p10 = pnand %p2150_p8, %p2336_p12 }
 0x882   : > { %p2156_p13 = por %p2155_p11, %p2154_p4 }
 0x883   : > { %p2152_p0 = pneg %p2151_p10 }
 0x884   : > { %p2158_p7 = por %p2157_p3, %p2156_p13 }
 0x886   : > { %p2159_p9 = pnand %p2158_p7, %p2152_p0 }
 0x888   : > { %2162 = shalt.err (!%p2159_p9)
}
 0x889   : > { %1935 = dma.vmem_to_hbm [thread:$0]  (%p2336_p12), %s2509_s26, 64, %s2507_s2, %s1435_s6  }
 0x88a PF: > { %s1460_s14 = sand.u32 1, %s2197_s15   ;;  %p2581_p1 = scmp.ne.s32.totalorder %s2566_s22, 0 }
 0x88b   : > { %p2582_p5 = scmp.ge.s32.totalorder %s2209_s18, 2  ;;  %s1461_s21 = scalar_lea.sflag [#allocation4], %s1460_s14 }
 0x88d   : > { %p1949_p2 = pnand %p2582_p5, %p2581_p1 }
 0x88f   : > { %2192 = dma.done.wait (!%p1949_p2), %s1461_s21, 64  }
 0x890   : > { %2194 = vsyncadd (!%p1949_p2), %s1461_s21, 4294967232  ;;  %s2583_s12 = sld [smem:[#allocation13_spill]]  ;;  %p20_p6 = scmp.ge.s32.totalorder %s2298_s27, 4  }
 0x891   : > { %s2584_s15 = smov %s2201_s16  ;;  %s2585_s16 = smov %s2205_s17 }
 0x892   : > { %s2587_s18 = smov %s2298_s27  ;;  %22 = sbr.rel (!%p20_p6) target bundleno = 10 (0xa), region = 98 }
 0x896   : > { %s2586_s17 = smov %s2583_s12 }
 0x899   :  { %1466 = vsyncpa [#allocation3], 1 }
 0x89a   :  { %1468 = vsyncpa [#allocation3 + $0x1], 1 }
 0x89b   :  { %1469 = vsyncpa [#allocation6], 1 }
 0x89c   :  { %1471 = vsyncpa [#allocation6 + $0x1], 1 }
 0x89d   :  { %1472 = vsyncpa [#allocation4], 1 }
 0x89e   :  { %1474 = vsyncpa [#allocation4 + $0x1], 1 }

</bundles_post_ra>
